<compile_context>
chip_gen: v7x
topology: tpu7x:2x2x1
jax: 0.10.0
libtpu: 0.0.40
codegen_flags: <defaults>
</compile_context>

<pallas_src>
import functools
import math
import random

import numpy as np
import jax
import jax.numpy as jnp
from jax import lax
from jax.experimental import pallas as pl
from jax.experimental.pallas import tpu as pltpu


_LANE = 128                      # fine-time samples per row (lane width)
_CHUNK_ROWS = 128                # rows (x128 samples) accumulated in vregs per chunk
_TAP_GROUP = 8                   # taps statically unrolled inside the fori loop
_K_BUCKET = 64                   # schedules padded to a multiple of this (shape reuse)
_VMEM_BUDGET = 12 * 1024 * 1024  # per-grid-step working-set target


# ----------------------------------------------------------------------------
# One-time probe: pltpu.roll lowers to the Mosaic dynamic-rotate op; verify its
# rotation direction once so the main kernel is correct under either
# convention (jnp.roll-style "towards higher indices" vs the opposite).
# ----------------------------------------------------------------------------
@functools.lru_cache(maxsize=None)
def _roll_matches_jnp_convention():
    def probe_kernel(s_ref, o_ref):
        idx = lax.broadcasted_iota(jnp.int32, (8, _LANE), 1).astype(jnp.float32)
        o_ref[...] = pltpu.roll(idx, s_ref[0], axis=1)

    out = pl.pallas_call(
        probe_kernel,
        out_shape=jax.ShapeDtypeStruct((8, _LANE), jnp.float32),
        in_specs=[pl.BlockSpec(memory_space=pltpu.MemorySpace.SMEM)],
        out_specs=pl.BlockSpec(memory_space=pltpu.MemorySpace.VMEM),
    )(jnp.array([1], jnp.int32))
    v = int(jax.device_get(out)[0, 0])
    if v == _LANE - 1:
        return True          # roll(x, s)[l] == x[(l - s) % n]   (jnp.roll)
    if v == 1:
        return False         # roll(x, s)[l] == x[(l + s) % n]
    raise RuntimeError(f"unexpected pltpu.roll semantics (probe read {v})")


# ----------------------------------------------------------------------------
# Host-side schedule construction (mirrors RevEcho._reverb RNG draw order).
# ----------------------------------------------------------------------------
def _build_schedule(rng, length, initial, first_delay, rt60, repeat, jitter,
                    sample_rate):
    """Cumulative (delay, gain) taps for one source:
       reverb(x) = sum_k gain_k * right_shift(x, delay_k)."""
    delays, gains = [], []
    for _ in range(repeat):
        frac = 1.0
        gain = initial
        cum = 0
        while frac > 0.001:
            jit = 1 + jitter * rng.uniform(-1, 1)
            delay = min(1 + int(jit * first_delay * sample_rate), length)
            cum = min(cum + delay, length)      # shifts compose; clamp at T
            delays.append(cum)
            gains.append(gain)
            jit = 1 + jitter * rng.uniform(-1, 1)
            attenuation = 10 ** (-3 * jit * first_delay / rt60)
            gain *= attenuation
            frac *= attenuation
    return np.asarray(delays, np.int64), np.asarray(gains, np.float32)


def _pack_schedules(dn, gn, dc, gc, length):
    """Split cumulative delays into (q, s) = (d // 128, d % 128) and pad both
    schedules to a common bucketed K so SMEM shapes are stable across calls.
    The *actual* number of 8-tap groups per source is returned separately and
    drives a dynamic fori bound in-kernel (no wasted work on padding taps)."""
    for d in (dn, dc):
        assert d.size == 0 or (d.min() >= 1 and d.max() <= length), \
            "delays must satisfy 1 <= d <= T"
    k = max(dn.size, dc.size, 1)
    k_pad = int(math.ceil(k / _K_BUCKET) * _K_BUCKET)

    def pack(d, g):
        q = np.zeros(k_pad, np.int32)
        s = np.zeros(k_pad, np.int32)
        gg = np.zeros(k_pad, np.float32)   # zero-gain padding taps are no-ops
        q[:d.size] = d // _LANE
        s[:d.size] = d % _LANE
        gg[:g.size] = g
        return q, s, gg

    ng = np.array([-(-dn.size // _TAP_GROUP), -(-dc.size // _TAP_GROUP)],
                  np.int32)
    return (ng,) + pack(dn, gn) + pack(dc, gc)


# ----------------------------------------------------------------------------
# Pallas kernel factory.
# ----------------------------------------------------------------------------
def _make_revecho_kernel(keep_clean, n_waves, rn, roll_is_jnp):
    kc = float(keep_clean)

    # Static chunk plan over coarse-time rows (vreg accumulation per chunk).
    chunks = []
    pos = 0
    while pos < rn:
        step = min(_CHUNK_ROWS, rn - pos)
        chunks.append((pos, step))
        pos += step

    def kernel(ng_ref,                                           # SMEM (2,)
               qn_ref, sn_ref, gn_ref, qc_ref, sc_ref, gc_ref,   # SMEM (K,)
               noise_ref, clean_ref,                             # (G, Rn, 128)
               out_ref,                                          # (2, G, Rn, 128)
               pad_n, pad_c):                                    # (G, Z+Rn, 128) f32
        z = pad_n.shape[1] - rn

        # Stage the sources (cast to f32) behind a zero-row prefix so every
        # delay 1 <= d <= T is an in-bounds sublane slice.  The prefix is
        # rewritten every step: scratch is per-core, so a program_id()==0
        # guard would be unsafe once the "parallel" grid axis is split across
        # megacore TensorCores.  Cost is ~1/K of the tap loop.
        zero_rows = jnp.zeros((z, _LANE), jnp.float32)
        for g in range(n_waves):
            pad_n[g, 0:z, :] = zero_rows
            pad_c[g, 0:z, :] = zero_rows
            pad_n[g, z:z + rn, :] = noise_ref[g].astype(jnp.float32)
            pad_c[g, z:z + rn, :] = clean_ref[g].astype(jnp.float32)

        def echo_sum(pad, g, q_ref, s_ref, gain_ref, n_groups, r0, cr, lane):
            # sum_k gain_k * right_shift(x, d_k) for rows [r0, r0+cr), carried
            # as a vreg accumulator through the unrolled-by-8 tap loop.
            def tap_group(grp, acc):
                for u in range(_TAP_GROUP):
                    k = grp * _TAP_GROUP + u
                    q = q_ref[k]            # d // 128  (sublane part)
                    s = s_ref[k]            # d % 128   (lane part)
                    gg = gain_ref[k]
                    a = pad[g, pl.ds(z - q + r0, cr), :]       # rows shifted by q
                    b = pad[g, pl.ds(z - q - 1 + r0, cr), :]   # ... by q + 1
                    # Resolve the row wrap BEFORE rotating: lanes that will
                    # wrap (lane >= 128 - s after the rotate) take row r-q-1.
                    # One select (VPU) + one roll (XLU) per tap.
                    m = jnp.where(lane < (_LANE - s), a, b)
                    s_rot = s if roll_is_jnp else (_LANE - s) % _LANE
                    acc = acc + gg * pltpu.roll(m, s_rot, axis=1)
                return acc
            return lax.fori_loop(0, n_groups, tap_group,
                                 jnp.zeros((cr, _LANE), jnp.float32))

        ng_n = ng_ref[0]   # actual tap-group counts (dynamic trip counts)
        ng_c = ng_ref[1]
        for g in range(n_waves):
            for r0, cr in chunks:
                lane = lax.broadcasted_iota(jnp.int32, (cr, _LANE), 1)
                rev_n = echo_sum(pad_n, g, qn_ref, sn_ref, gn_ref, ng_n,
                                 r0, cr, lane)
                rev_c = echo_sum(pad_c, g, qc_ref, sc_ref, gc_ref, ng_c,
                                 r0, cr, lane)
                x_n = pad_n[g, z + r0:z + r0 + cr, :]
                x_c = pad_c[g, z + r0:z + r0 + cr, :]
                # noise += rev_n; clean += keep*rev_c; noise += (1-keep)*rev_c
                out_ref[0, g, r0:r0 + cr, :] = (
                    x_n + rev_n + (1.0 - kc) * rev_c).astype(out_ref.dtype)
                out_ref[1, g, r0:r0 + cr, :] = (
                    x_c + kc * rev_c).astype(out_ref.dtype)

    return kernel


def _pick_wave_block(n_waves, rn):
    """Waveform-pairs per grid step: fold small batches to amortize the
    ~0.35us per-step overhead while bounding VMEM and unrolled code size."""
    n_chunks = -(-rn // _CHUNK_ROWS)
    wave_bytes = rn * _LANE * 4
    best = 1
    for g in range(1, n_waves + 1):
        # ~12 G-sized buffers live per step (double-buffered in/out + 2 pads).
        if g > 16 or g * n_chunks > 16 or 12 * g * wave_bytes > _VMEM_BUDGET:
            break
        if n_waves % g == 0:
            best = g
    return best


def _revecho_apply(wav, dn, gn, dc, gc, keep_clean):
    two, b, c, t = wav.shape
    assert two == 2
    t_pad = int(math.ceil(t / _LANE) * _LANE)
    if t_pad != t:
        # zero-pad the tail: the reverb is causal, so out[..., :t] is exact.
        wav_p = jnp.pad(wav, ((0, 0), (0, 0), (0, 0), (0, t_pad - t)))
    else:
        wav_p = wav
    rn = t_pad // _LANE
    bc = b * c

    ng, qn, sn, gnp, qc, sc, gcp = _pack_schedules(dn, gn, dc, gc, t)
    g_block = _pick_wave_block(bc, rn)
    z = rn + 8                     # zero-prefix rows; covers q <= rn (d <= T)

    # Pure reshapes (no transposes): (B, C, T) -> (B*C, T/128, 128).
    noise = wav_p[0].reshape(bc, rn, _LANE)
    clean = wav_p[1].reshape(bc, rn, _LANE)

    kernel = _make_revecho_kernel(keep_clean, g_block, rn,
                                  _roll_matches_jnp_convention())

    smem = pl.BlockSpec(memory_space=pltpu.MemorySpace.SMEM)
    out = pl.pallas_call(
        kernel,
        out_shape=jax.ShapeDtypeStruct((2, bc, rn, _LANE), wav.dtype),
        grid=(bc // g_block,),
        in_specs=[smem, smem, smem, smem, smem, smem, smem,
                  pl.BlockSpec((g_block, rn, _LANE), lambda i: (i, 0, 0)),
                  pl.BlockSpec((g_block, rn, _LANE), lambda i: (i, 0, 0))],
        out_specs=pl.BlockSpec((2, g_block, rn, _LANE),
                               lambda i: (0, i, 0, 0)),
        scratch_shapes=[
            pltpu.VMEM((g_block, z + rn, _LANE), jnp.float32),  # padded noise
            pltpu.VMEM((g_block, z + rn, _LANE), jnp.float32),  # padded clean
        ],
        compiler_params=pltpu.CompilerParams(
            dimension_semantics=("parallel",),   # waveforms are independent
            vmem_limit_bytes=48 * 1024 * 1024,
        ),
    )(jnp.asarray(ng),
      jnp.asarray(qn), jnp.asarray(sn), jnp.asarray(gnp),
      jnp.asarray(qc), jnp.asarray(sc), jnp.asarray(gcp),
      noise, clean)

    out = out.reshape(2, b, c, t_pad)
    if t_pad != t:
        out = out[..., :t]
    return out


# ----------------------------------------------------------------------------
# Forward wrapper (same semantics as RevEcho.forward).
# ----------------------------------------------------------------------------
def revecho_forward(wav, rng, *, proba=0.5, initial=0.3, rt60=(0.3, 1.3),
                    first_delay=(0.01, 0.03), repeat=3, jitter=0.1,
                    keep_clean=0.1, sample_rate=16000):
    """wav: (2, B, C, T) stacked [noise, clean]; rng: python random.Random."""
    if rng.random() >= proba:           # data-independent Python-RNG gate
        return wav
    init = rng.random() * initial
    fd = rng.uniform(*first_delay)
    r60 = rng.uniform(*rt60)
    t = wav.shape[-1]
    dn, gn = _build_schedule(rng, t, init, fd, r60, repeat, jitter, sample_rate)
    dc, gc = _build_schedule(rng, t, init, fd, r60, repeat, jitter, sample_rate)
    return _revecho_apply(wav, dn, gn, dc, gc, keep_clean)


# ----------------------------------------------------------------------------
# Numpy reference (same schedules, same summation order) for a sanity check.
# ----------------------------------------------------------------------------
def _reverb_ref(src, delays, gains):
    t = src.shape[-1]
    out = np.zeros_like(src)
    for d, g in zip(delays, gains):
        d = int(d)
        if d < t:
            out[..., d:] += np.float32(g) * src[..., : t - d]
    return out


if __name__ == "__main__":
    B, C, T = 2, 4, 256
    key = jax.random.PRNGKey(0)
    wav = jax.random.normal(key, (2, B, C, T), dtype=jnp.float32)

    seed = 1  # random.Random(1).random() ~= 0.134 < proba=0.5 -> reverb applied
    out = revecho_forward(wav, random.Random(seed))
    out = jax.block_until_ready(out)

    # --- reference (replay the same RNG draws host-side) ---
    rng = random.Random(seed)
    _ = rng.random()                       # proba gate
    init = rng.random() * 0.3
    fd = rng.uniform(0.01, 0.03)
    r60 = rng.uniform(0.3, 1.3)
    dn, gn = _build_schedule(rng, T, init, fd, r60, 3, 0.1, 16000)
    dc, gc = _build_schedule(rng, T, init, fd, r60, 3, 0.1, 16000)

    wav_np = np.asarray(wav)
    noise_np, clean_np = wav_np[0], wav_np[1]
    rev_n = _reverb_ref(noise_np, dn, gn)
    rev_c = _reverb_ref(clean_np, dc, gc)
    keep = 0.1
    ref = np.stack([noise_np + rev_n + (1.0 - keep) * rev_c,
                    clean_np + keep * rev_c])

    np.testing.assert_allclose(np.asarray(out), ref, rtol=2e-3, atol=2e-3)
    print("KERNEL_OK")
</pallas_src>

<mosaic_0001>
module attributes {stable_mosaic.version = 11 : i64} {
  func.func @probe_kernel(%arg0: memref<1xi32, #tpu.memory_space<smem>>, %arg1: memref<8x128xf32, #tpu.memory_space<vmem>>) attributes {dimension_semantics = [], scalar_prefetch = 0 : i64, scratch_operands = 0 : i64, tpu.core_type = #tpu.core_type<tc>} {
    %0 = tpu.iota {dimensions = array<i32: 1>} : vector<8x128xi32>
    %1 = arith.sitofp %0 : vector<8x128xi32> to vector<8x128xf32>
    %c0 = arith.constant 0 : index
    %2 = memref.load %arg0[%c0] : memref<1xi32, #tpu.memory_space<smem>>
    %3 = tpu.dynamic_rotate %1 by %2 dim 1 : vector<8x128xf32>, i32 -> vector<8x128xf32>
    %c0_0 = arith.constant 0 : index
    %c0_1 = arith.constant 0 : index
    %4 = vector.load %arg1[%c0_0, %c0_1] : memref<8x128xf32, #tpu.memory_space<vmem>>, vector<8x128xf32>
    tpu.vector_store %arg1[%c0_0, %c0_1], %3 {strides = array<i32>} : memref<8x128xf32, #tpu.memory_space<vmem>>, vector<8x128xf32>,
    return
  }
}

</mosaic_0001>

<bundles_post_ra>
// kernel: tpu_custom_call.1
= control target key start
LH: loop header
LB: loop body
LE: loop exit
PB: predicated region body
PF: predicated region fallthrough
CT: control target
= control target key end

     0   :  { %v10_v0 = vlaneseq  ;;  %s84_s0 = inlined_call_operand.<no memory space> [shape: s32[1], index: 0, kind: input, shape index: {}]   ;;  %s85_s1 = inlined_call_operand.hbm [shape: f32[8,128], index: 1, kind: output, shape index: {}]  }
   0x1   :  { %7 = vsyncpa [#allocation4], 0  ;;  %s14_s8 = sand.u32 127, %s84_s0   ;;  %s58_s9 = smov [#allocation3]  }
   0x2   :  { %v11_v1 = vand.u32 127, %v10_v0  ;;  %s25_s10 = sshll.u32 %s58_s9, 4  ;;  %s26_s10 = int_to_ptr.vmem [resolvable:$true] %s25_s10 }
   0x3   :  { %s34_s11 = scalar_lea.vmem %s26_s10, 128  ;;  %p39_p1 = scmp.lt.s32.totalorder %s26_s10, %s26_s10 }
   0x4   :  { %v12_v2 = vcvt.s32.f32 %v11_v1  ;;  %p35_p0 = scmp.ne.s32.totalorder %s26_s10, %s34_s11  ;;  %p40_p2 = scmp.lt.s32.totalorder %s34_s11, %s34_s11 }
   0x6   :  { %16 = vrot.lane.b32.xlu0 %v12_v2, %s14_s8  ;;  %p41_p3 = por %p40_p2, %p39_p1 }
   0x8   :  { %p42_p4 = pnand %p41_p3, %p35_p0 }
  0x78   :  { %v17_v3 = vpop.permute.xlu0 %16 }
  0x79   :  { %18 = vst [vmem:[#allocation3] sm:$0xff] %v17_v3 }
  0x7a   :  { %45 = shalt.err (!%p42_p4)
}
  0x7b   :  { %s46_s14 = scalar_lea.hbm %s85_s1, 128 }
  0x7c   :  { %p47_p5 = scmp.ne.s32.totalorder %s85_s1, %s46_s14  ;;  %p50_p6 = scmp.lt.u32.totalorder %s46_s14, %s85_s1 }
  0x7e   :  { %p52_p7 = pnand %p50_p6, %p47_p5 }
  0x80   :  { %55 = shalt.err (!%p52_p7)
}
  0x81   :  { %28 = dma.vmem_to_hbm [thread:$0]  %s26_s10, 128, %s85_s1, [#allocation4]  }
  0x82   :  { %56 = dma.done.wait [#allocation4], 128  }
  0x83   :  { %57 = vsyncadd [#allocation4], 4294967168 }
  0x84   :  { %32 = vsyncpa [#allocation4], 1 }

</bundles_post_ra>
